<compile_context>
chip_gen: v5e
topology: v5e:2x2
jax: 0.10.0
libtpu: 0.0.40
codegen_flags: <defaults>
</compile_context>

<pallas_src>
import jax
import jax.numpy as jnp
import numpy as np
from jax.experimental import pallas as pl
from jax.experimental.pallas import tpu as pltpu


def _dice_ce_stats_kernel(p_ref, y_ref, cls_ref, out_ref,
                          inter_acc, p2_acc, cnt_acc, nll_acc):
    j = pl.program_id(1)

    @pl.when(j == 0)
    def _():
        inter_acc[...] = jnp.zeros_like(inter_acc)
        p2_acc[...] = jnp.zeros_like(p2_acc)
        cnt_acc[...] = jnp.zeros_like(cnt_acc)
        nll_acc[...] = jnp.zeros_like(nll_acc)

    x = p_ref[...].astype(jnp.float32)        # (N, C, TG, 128) logits (upcast in-kernel)
    y = y_ref[...]                            # (N, 1, TG, 128) int32 labels, -1 == padded
    cls = cls_ref[...]                        # (1, C, 1, 128) class ids

    # softmax / log-softmax over the class axis (axis=1).  Class lives on the vreg-count
    # axis, so these reductions are elementwise across per-class vregs (pure VPU).
    m = jnp.max(x, axis=1, keepdims=True)                 # (N, 1, TG, 128)
    e = jnp.exp(x - m)                                    # (N, C, TG, 128)
    denom = jnp.sum(e, axis=1, keepdims=True)             # (N, 1, TG, 128)
    inv = pl.reciprocal(denom, approx=False)              # one reciprocal per pixel, not per class
    probs = e * inv                                       # softmax probabilities
    lse = m + jnp.log(denom)                              # logsumexp per pixel

    t = (cls == y).astype(jnp.float32)                    # one-hot target (N, C, TG, 128)
    valid = (y >= 0).astype(jnp.float32)                  # mask out padded pixels

    # Per-step accumulation is purely elementwise into lane/sublane-wide scratch
    # (sum over N is an elementwise vreg add); no cross-lane work in the hot loop.
    inter_acc[...] += jnp.sum(probs * t, axis=0)                  # sum p * t
    p2_acc[...]    += jnp.sum(probs * probs * valid, axis=0)      # sum p * p (masked)
    cnt_acc[...]   += jnp.sum(t, axis=0)                          # sum t * t == class count
    nll_acc[...]   += jnp.sum((lse - x) * t, axis=0)              # -log_softmax at label

    @pl.when(j == pl.num_programs(1) - 1)
    def _():
        # One cross-sublane reduce per split; the 128-lane axis is reduced in the wrapper.
        out_ref[0, 0, :, :] = jnp.sum(inter_acc[...], axis=1)     # (C, 128)
        out_ref[0, 1, :, :] = jnp.sum(p2_acc[...], axis=1)
        out_ref[0, 2, :, :] = jnp.sum(cnt_acc[...], axis=1)
        out_ref[0, 3, :, :] = jnp.sum(nll_acc[...], axis=1)


def dice_ce_loss(predict, label, num_classes, alpha=1.0):
    """predict: (N, C, H, W) float logits; label: (N, 1, H, W) integer-valued class map."""
    N, C, H, W = predict.shape
    assert C == num_classes
    HW = H * W
    LANES = 128
    G = -(-HW // LANES)                       # number of 128-lane pixel groups

    # Tile the pixel-group axis: target ~32K pixels (N*TG*128) per grid step while keeping
    # the f32 logits block around <= 1 MiB.  TG must be a multiple of 8 (sublane tiling)
    # unless one tile covers the whole (padded) axis.
    tg_cap = max(1, min(32768 // (N * LANES), (1 << 20) // (N * C * LANES * 4)))
    if G <= tg_cap:
        TG, nsplit, steps, total_tiles = G, 1, 1, 1
    else:
        TG = max(8, (tg_cap // 8) * 8)
        total_tiles = -(-G // TG)
        nsplit = 2 if total_tiles >= 2 else 1          # leading "parallel" axis -> 2 TCs on v7x
        total_tiles = -(-total_tiles // nsplit) * nsplit
        steps = total_tiles // nsplit
    Gp = total_tiles * TG
    Mp = Gp * LANES

    # Free reshapes only (no transpose, no upcast). Pad the pixel axis only if needed;
    # padded pixels get label -1 and are masked inside the kernel.
    p3 = predict.reshape(N, C, HW)
    y3 = label.reshape(N, 1, HW).astype(jnp.int32)
    if Mp != HW:
        p3 = jnp.pad(p3, ((0, 0), (0, 0), (0, Mp - HW)))
        y3 = jnp.pad(y3, ((0, 0), (0, 0), (0, Mp - HW)), constant_values=-1)
    p4 = p3.reshape(N, C, Gp, LANES)
    y4 = y3.reshape(N, 1, Gp, LANES)
    cls_ids = jnp.broadcast_to(
        jnp.arange(C, dtype=jnp.int32).reshape(1, C, 1, 1), (1, C, 1, LANES))

    # Explicit scoped-VMEM budget: double-buffered input blocks + accumulators + headroom
    # for the f32 elementwise temporaries of one block.
    pred_blk = N * C * TG * LANES * predict.dtype.itemsize
    lab_blk = N * TG * LANES * 4
    acc_blk = 4 * C * TG * LANES * 4
    tmp_blk = 12 * N * C * TG * LANES * 4
    vmem_limit = int(min(max(2 * (pred_blk + lab_blk) + acc_blk + tmp_blk + (2 << 20),
                             16 << 20), 48 << 20))

    stats = pl.pallas_call(
        _dice_ce_stats_kernel,
        out_shape=jax.ShapeDtypeStruct((nsplit, 4, C, LANES), jnp.float32),
        grid_spec=pltpu.PrefetchScalarGridSpec(
            num_scalar_prefetch=0,
            grid=(nsplit, steps),
            in_specs=[
                pl.BlockSpec((N, C, TG, LANES), lambda i, j: (0, 0, i * steps + j, 0)),
                pl.BlockSpec((N, 1, TG, LANES), lambda i, j: (0, 0, i * steps + j, 0)),
                pl.BlockSpec((1, C, 1, LANES), lambda i, j: (0, 0, 0, 0)),
            ],
            out_specs=pl.BlockSpec((1, 4, C, LANES), lambda i, j: (i, 0, 0, 0)),
            scratch_shapes=[pltpu.VMEM((C, TG, LANES), jnp.float32)] * 4,
        ),
        compiler_params=pltpu.CompilerParams(
            dimension_semantics=("parallel", "arbitrary"),
            vmem_limit_bytes=vmem_limit),
    )(p4, y4, cls_ids)

    # Tiny finalize on per-split, per-class partial sums (a few dozen scalar flops).
    s = jnp.sum(stats, axis=(0, 3))           # (4, C): intersect, sum p^2, count, class NLL
    inter, p2, cnt, nll = s[0], s[1], s[2], s[3]
    smooth = 1e-05
    dice_c = (2.0 * inter + smooth) / (cnt + p2 + smooth)
    dice_loss = jnp.sum(1.0 - dice_c) / num_classes
    total = jnp.sum(cnt)
    w = 1.0 - cnt / total
    ce = jnp.sum(w * nll) / jnp.sum(w * cnt)  # PyTorch weighted-mean reduction
    loss = ce + alpha * dice_loss
    return dice_loss, ce, loss


def ref_dice_ce(predict, label, num_classes, alpha=1.0):
    """Pure-JAX reference matching the PyTorch DiceCeLoss forward."""
    probs = jax.nn.softmax(predict, axis=1)
    lab = label[:, 0].astype(jnp.int32)                     # (N, H, W)
    smooth = 1e-05
    dls = 0.0
    for i in range(num_classes):
        p = probs[:, i]
        t = (lab == i).astype(jnp.float32)
        inter = jnp.sum(p * t)
        dice = (2 * inter + smooth) / (jnp.sum(t * t) + jnp.sum(p * p) + smooth)
        dls = dls + (1.0 - dice)
    diceloss = dls / num_classes
    counts = jnp.stack([jnp.sum(lab == c).astype(jnp.float32) for c in range(num_classes)])
    w = 1.0 - counts / jnp.sum(counts)
    logp = jax.nn.log_softmax(predict, axis=1)
    nll = -jnp.take_along_axis(logp, lab[:, None], axis=1)[:, 0]
    wpix = w[lab]
    ce = jnp.sum(wpix * nll) / jnp.sum(wpix)
    return diceloss, ce, ce + alpha * diceloss


if __name__ == "__main__":
    N, C, H, W = 2, 4, 16, 16
    alpha = 1.0
    key = jax.random.PRNGKey(0)
    k1, k2 = jax.random.split(key)
    predict = jax.random.normal(k1, (N, C, H, W), dtype=jnp.float32)
    label = jax.random.randint(k2, (N, 1, H, W), 0, C, dtype=jnp.int32)

    dice, ce, loss = dice_ce_loss(predict, label, num_classes=C, alpha=alpha)
    jax.block_until_ready(loss)

    dice_r, ce_r, loss_r = ref_dice_ce(predict, label, num_classes=C, alpha=alpha)
    np.testing.assert_allclose(np.asarray(dice), np.asarray(dice_r), rtol=1e-4, atol=1e-5)
    np.testing.assert_allclose(np.asarray(ce), np.asarray(ce_r), rtol=1e-4, atol=1e-5)
    np.testing.assert_allclose(np.asarray(loss), np.asarray(loss_r), rtol=1e-4, atol=1e-5)

    print("KERNEL_OK")
</pallas_src>

<mosaic_0001>
module attributes {stable_mosaic.version = 11 : i64} {
  func.func @_dice_ce_stats_kernel(%arg0: i32, %arg1: i32, %arg2: memref<2x4x2x128xf32, #tpu.memory_space<vmem>>, %arg3: memref<2x1x2x128xi32, #tpu.memory_space<vmem>>, %arg4: memref<1x4x1x128xi32, #tpu.memory_space<vmem>>, %arg5: memref<1x4x4x128xf32, #tpu.memory_space<vmem>>, %arg6: memref<4x2x128xf32, #tpu.memory_space<vmem>>, %arg7: memref<4x2x128xf32, #tpu.memory_space<vmem>>, %arg8: memref<4x2x128xf32, #tpu.memory_space<vmem>>, %arg9: memref<4x2x128xf32, #tpu.memory_space<vmem>>) attributes {dimension_semantics = [#tpu.dimension_semantics<parallel>, #tpu.dimension_semantics<arbitrary>], iteration_bounds = array<i64: 1, 1>, scalar_prefetch = 0 : i64, scratch_operands = 4 : i64, tpu.core_type = #tpu.core_type<tc>, window_params = [{transform_indices = @transform_0, window_bounds = array<i64: 2, 4, 2, 128>}, {transform_indices = @transform_1, window_bounds = array<i64: 2, 1, 2, 128>}, {pipeline_mode = #tpu.pipeline_mode<synchronous>, transform_indices = @transform_2, window_bounds = array<i64: 1, 4, 1, 128>}, {transform_indices = @transform_3, window_bounds = array<i64: 1, 4, 4, 128>}]} {
    %c0_i32 = arith.constant 0 : i32
    %0 = arith.cmpi eq, %arg1, %c0_i32 : i32
    %1 = arith.extui %0 : i1 to i32
    %c0_i32_0 = arith.constant 0 : i32
    %2 = arith.cmpi ne, %1, %c0_i32_0 : i32
    scf.if %2 {
      %cst_44 = arith.constant 0.000000e+00 : f32
      %53 = vector.broadcast %cst_44 : f32 to vector<4x2x128xf32>
      %c0_45 = arith.constant 0 : index
      %c0_46 = arith.constant 0 : index
      %c0_47 = arith.constant 0 : index
      %54 = vector.load %arg6[%c0_45, %c0_46, %c0_47] : memref<4x2x128xf32, #tpu.memory_space<vmem>>, vector<4x2x128xf32>
      tpu.vector_store %arg6[%c0_45, %c0_46, %c0_47], %53 {strides = array<i32>} : memref<4x2x128xf32, #tpu.memory_space<vmem>>, vector<4x2x128xf32>,
      %cst_48 = arith.constant 0.000000e+00 : f32
      %55 = vector.broadcast %cst_48 : f32 to vector<4x2x128xf32>
      %c0_49 = arith.constant 0 : index
      %c0_50 = arith.constant 0 : index
      %c0_51 = arith.constant 0 : index
      %56 = vector.load %arg7[%c0_49, %c0_50, %c0_51] : memref<4x2x128xf32, #tpu.memory_space<vmem>>, vector<4x2x128xf32>
      tpu.vector_store %arg7[%c0_49, %c0_50, %c0_51], %55 {strides = array<i32>} : memref<4x2x128xf32, #tpu.memory_space<vmem>>, vector<4x2x128xf32>,
      %cst_52 = arith.constant 0.000000e+00 : f32
      %57 = vector.broadcast %cst_52 : f32 to vector<4x2x128xf32>
      %c0_53 = arith.constant 0 : index
      %c0_54 = arith.constant 0 : index
      %c0_55 = arith.constant 0 : index
      %58 = vector.load %arg8[%c0_53, %c0_54, %c0_55] : memref<4x2x128xf32, #tpu.memory_space<vmem>>, vector<4x2x128xf32>
      tpu.vector_store %arg8[%c0_53, %c0_54, %c0_55], %57 {strides = array<i32>} : memref<4x2x128xf32, #tpu.memory_space<vmem>>, vector<4x2x128xf32>,
      %cst_56 = arith.constant 0.000000e+00 : f32
      %59 = vector.broadcast %cst_56 : f32 to vector<4x2x128xf32>
      %c0_57 = arith.constant 0 : index
      %c0_58 = arith.constant 0 : index
      %c0_59 = arith.constant 0 : index
      %60 = vector.load %arg9[%c0_57, %c0_58, %c0_59] : memref<4x2x128xf32, #tpu.memory_space<vmem>>, vector<4x2x128xf32>
      tpu.vector_store %arg9[%c0_57, %c0_58, %c0_59], %59 {strides = array<i32>} : memref<4x2x128xf32, #tpu.memory_space<vmem>>, vector<4x2x128xf32>,
    } else {
    }
    %c0 = arith.constant 0 : index
    %c0_1 = arith.constant 0 : index
    %c0_2 = arith.constant 0 : index
    %c0_3 = arith.constant 0 : index
    %3 = vector.load %arg2[%c0, %c0_1, %c0_2, %c0_3] : memref<2x4x2x128xf32, #tpu.memory_space<vmem>>, vector<2x4x2x128xf32>
    %c0_4 = arith.constant 0 : index
    %c0_5 = arith.constant 0 : index
    %c0_6 = arith.constant 0 : index
    %c0_7 = arith.constant 0 : index
    %4 = vector.load %arg3[%c0_4, %c0_5, %c0_6, %c0_7] : memref<2x1x2x128xi32, #tpu.memory_space<vmem>>, vector<2x1x2x128xi32>
    %c0_8 = arith.constant 0 : index
    %c0_9 = arith.constant 0 : index
    %c0_10 = arith.constant 0 : index
    %c0_11 = arith.constant 0 : index
    %5 = vector.load %arg4[%c0_8, %c0_9, %c0_10, %c0_11] : memref<1x4x1x128xi32, #tpu.memory_space<vmem>>, vector<1x4x1x128xi32>
    %cst = arith.constant dense<0xFF800000> : vector<2x2x128xf32>
    %6 = vector.multi_reduction <maximumf>, %3, %cst [1] : vector<2x4x2x128xf32> to vector<2x2x128xf32>
    %7 = vector.shape_cast %6 : vector<2x2x128xf32> to vector<2x1x2x128xf32>
    %8 = vector.broadcast %7 : vector<2x1x2x128xf32> to vector<2x4x2x128xf32>
    %9 = arith.subf %3, %8 : vector<2x4x2x128xf32>
    %10 = math.exp %9 : vector<2x4x2x128xf32>
    %cst_12 = arith.constant dense<0.000000e+00> : vector<2x2x128xf32>
    %11 = vector.multi_reduction <add>, %10, %cst_12 [1] : vector<2x4x2x128xf32> to vector<2x2x128xf32>
    %12 = vector.shape_cast %11 : vector<2x2x128xf32> to vector<2x1x2x128xf32>
    %13 = tpu.reciprocal %12 : vector<2x1x2x128xf32> -> vector<2x1x2x128xf32>
    %14 = vector.broadcast %13 : vector<2x1x2x128xf32> to vector<2x4x2x128xf32>
    %15 = arith.mulf %10, %14 : vector<2x4x2x128xf32>
    %16 = math.log %12 : vector<2x1x2x128xf32>
    %17 = arith.addf %7, %16 : vector<2x1x2x128xf32>
    %18 = vector.broadcast %5 : vector<1x4x1x128xi32> to vector<2x4x2x128xi32>
    %19 = vector.broadcast %4 : vector<2x1x2x128xi32> to vector<2x4x2x128xi32>
    %20 = arith.cmpi eq, %18, %19 : vector<2x4x2x128xi32>
    %21 = arith.extui %20 : vector<2x4x2x128xi1> to vector<2x4x2x128xi32>
    %22 = arith.sitofp %21 : vector<2x4x2x128xi32> to vector<2x4x2x128xf32>
    %c0_i32_13 = arith.constant 0 : i32
    %23 = vector.broadcast %c0_i32_13 : i32 to vector<2x1x2x128xi32>
    %24 = arith.cmpi sge, %4, %23 : vector<2x1x2x128xi32>
    %25 = arith.extui %24 : vector<2x1x2x128xi1> to vector<2x1x2x128xi32>
    %26 = arith.sitofp %25 : vector<2x1x2x128xi32> to vector<2x1x2x128xf32>
    %c0_14 = arith.constant 0 : index
    %c0_15 = arith.constant 0 : index
    %c0_16 = arith.constant 0 : index
    %27 = vector.load %arg6[%c0_14, %c0_15, %c0_16] : memref<4x2x128xf32, #tpu.memory_space<vmem>>, vector<4x2x128xf32>
    %28 = arith.mulf %15, %22 : vector<2x4x2x128xf32>
    %cst_17 = arith.constant dense<0.000000e+00> : vector<4x2x128xf32>
    %29 = vector.multi_reduction <add>, %28, %cst_17 [0] : vector<2x4x2x128xf32> to vector<4x2x128xf32>
    %30 = arith.addf %27, %29 : vector<4x2x128xf32>
    %c0_18 = arith.constant 0 : index
    %c0_19 = arith.constant 0 : index
    %c0_20 = arith.constant 0 : index
    %31 = vector.load %arg6[%c0_18, %c0_19, %c0_20] : memref<4x2x128xf32, #tpu.memory_space<vmem>>, vector<4x2x128xf32>
    tpu.vector_store %arg6[%c0_18, %c0_19, %c0_20], %30 {strides = array<i32>} : memref<4x2x128xf32, #tpu.memory_space<vmem>>, vector<4x2x128xf32>,
    %c0_21 = arith.constant 0 : index
    %c0_22 = arith.constant 0 : index
    %c0_23 = arith.constant 0 : index
    %32 = vector.load %arg7[%c0_21, %c0_22, %c0_23] : memref<4x2x128xf32, #tpu.memory_space<vmem>>, vector<4x2x128xf32>
    %33 = arith.mulf %15, %15 : vector<2x4x2x128xf32>
    %34 = vector.broadcast %26 : vector<2x1x2x128xf32> to vector<2x4x2x128xf32>
    %35 = arith.mulf %33, %34 : vector<2x4x2x128xf32>
    %cst_24 = arith.constant dense<0.000000e+00> : vector<4x2x128xf32>
    %36 = vector.multi_reduction <add>, %35, %cst_24 [0] : vector<2x4x2x128xf32> to vector<4x2x128xf32>
    %37 = arith.addf %32, %36 : vector<4x2x128xf32>
    %c0_25 = arith.constant 0 : index
    %c0_26 = arith.constant 0 : index
    %c0_27 = arith.constant 0 : index
    %38 = vector.load %arg7[%c0_25, %c0_26, %c0_27] : memref<4x2x128xf32, #tpu.memory_space<vmem>>, vector<4x2x128xf32>
    tpu.vector_store %arg7[%c0_25, %c0_26, %c0_27], %37 {strides = array<i32>} : memref<4x2x128xf32, #tpu.memory_space<vmem>>, vector<4x2x128xf32>,
    %c0_28 = arith.constant 0 : index
    %c0_29 = arith.constant 0 : index
    %c0_30 = arith.constant 0 : index
    %39 = vector.load %arg8[%c0_28, %c0_29, %c0_30] : memref<4x2x128xf32, #tpu.memory_space<vmem>>, vector<4x2x128xf32>
    %cst_31 = arith.constant dense<0.000000e+00> : vector<4x2x128xf32>
    %40 = vector.multi_reduction <add>, %22, %cst_31 [0] : vector<2x4x2x128xf32> to vector<4x2x128xf32>
    %41 = arith.addf %39, %40 : vector<4x2x128xf32>
    %c0_32 = arith.constant 0 : index
    %c0_33 = arith.constant 0 : index
    %c0_34 = arith.constant 0 : index
    %42 = vector.load %arg8[%c0_32, %c0_33, %c0_34] : memref<4x2x128xf32, #tpu.memory_space<vmem>>, vector<4x2x128xf32>
    tpu.vector_store %arg8[%c0_32, %c0_33, %c0_34], %41 {strides = array<i32>} : memref<4x2x128xf32, #tpu.memory_space<vmem>>, vector<4x2x128xf32>,
    %c0_35 = arith.constant 0 : index
    %c0_36 = arith.constant 0 : index
    %c0_37 = arith.constant 0 : index
    %43 = vector.load %arg9[%c0_35, %c0_36, %c0_37] : memref<4x2x128xf32, #tpu.memory_space<vmem>>, vector<4x2x128xf32>
    %44 = vector.broadcast %17 : vector<2x1x2x128xf32> to vector<2x4x2x128xf32>
    %45 = arith.subf %44, %3 : vector<2x4x2x128xf32>
    %46 = arith.mulf %45, %22 : vector<2x4x2x128xf32>
    %cst_38 = arith.constant dense<0.000000e+00> : vector<4x2x128xf32>
    %47 = vector.multi_reduction <add>, %46, %cst_38 [0] : vector<2x4x2x128xf32> to vector<4x2x128xf32>
    %48 = arith.addf %43, %47 : vector<4x2x128xf32>
    %c0_39 = arith.constant 0 : index
    %c0_40 = arith.constant 0 : index
    %c0_41 = arith.constant 0 : index
    %49 = vector.load %arg9[%c0_39, %c0_40, %c0_41] : memref<4x2x128xf32, #tpu.memory_space<vmem>>, vector<4x2x128xf32>
    tpu.vector_store %arg9[%c0_39, %c0_40, %c0_41], %48 {strides = array<i32>} : memref<4x2x128xf32, #tpu.memory_space<vmem>>, vector<4x2x128xf32>,
    %c0_i32_42 = arith.constant 0 : i32
    %50 = arith.cmpi eq, %arg1, %c0_i32_42 : i32
    %51 = arith.extui %50 : i1 to i32
    %c0_i32_43 = arith.constant 0 : i32
    %52 = arith.cmpi ne, %51, %c0_i32_43 : i32
    scf.if %52 {
      %c0_44 = arith.constant 0 : index
      %c0_45 = arith.constant 0 : index
      %c0_46 = arith.constant 0 : index
      %53 = vector.load %arg6[%c0_44, %c0_45, %c0_46] : memref<4x2x128xf32, #tpu.memory_space<vmem>>, vector<4x2x128xf32>
      %cst_47 = arith.constant dense<0.000000e+00> : vector<4x128xf32>
      %54 = vector.multi_reduction <add>, %53, %cst_47 [1] : vector<4x2x128xf32> to vector<4x128xf32>
      %c0_48 = arith.constant 0 : index
      %c0_49 = arith.constant 0 : index
      %c0_50 = arith.constant 0 : index
      %c0_51 = arith.constant 0 : index
      %55 = vector.load %arg5[%c0_48, %c0_49, %c0_50, %c0_51] : memref<1x4x4x128xf32, #tpu.memory_space<vmem>>, vector<1x1x4x128xf32>
      %56 = vector.shape_cast %55 : vector<1x1x4x128xf32> to vector<4x128xf32>
      %57 = vector.shape_cast %54 : vector<4x128xf32> to vector<1x1x4x128xf32>
      tpu.vector_store %arg5[%c0_48, %c0_49, %c0_50, %c0_51], %57 {strides = array<i32>} : memref<1x4x4x128xf32, #tpu.memory_space<vmem>>, vector<1x1x4x128xf32>,
      %c0_52 = arith.constant 0 : index
      %c0_53 = arith.constant 0 : index
      %c0_54 = arith.constant 0 : index
      %58 = vector.load %arg7[%c0_52, %c0_53, %c0_54] : memref<4x2x128xf32, #tpu.memory_space<vmem>>, vector<4x2x128xf32>
      %cst_55 = arith.constant dense<0.000000e+00> : vector<4x128xf32>
      %59 = vector.multi_reduction <add>, %58, %cst_55 [1] : vector<4x2x128xf32> to vector<4x128xf32>
      %c0_56 = arith.constant 0 : index
      %c1 = arith.constant 1 : index
      %c0_57 = arith.constant 0 : index
      %c0_58 = arith.constant 0 : index
      %60 = vector.load %arg5[%c0_56, %c1, %c0_57, %c0_58] : memref<1x4x4x128xf32, #tpu.memory_space<vmem>>, vector<1x1x4x128xf32>
      %61 = vector.shape_cast %60 : vector<1x1x4x128xf32> to vector<4x128xf32>
      %62 = vector.shape_cast %59 : vector<4x128xf32> to vector<1x1x4x128xf32>
      tpu.vector_store %arg5[%c0_56, %c1, %c0_57, %c0_58], %62 {strides = array<i32>} : memref<1x4x4x128xf32, #tpu.memory_space<vmem>>, vector<1x1x4x128xf32>,
      %c0_59 = arith.constant 0 : index
      %c0_60 = arith.constant 0 : index
      %c0_61 = arith.constant 0 : index
      %63 = vector.load %arg8[%c0_59, %c0_60, %c0_61] : memref<4x2x128xf32, #tpu.memory_space<vmem>>, vector<4x2x128xf32>
      %cst_62 = arith.constant dense<0.000000e+00> : vector<4x128xf32>
      %64 = vector.multi_reduction <add>, %63, %cst_62 [1] : vector<4x2x128xf32> to vector<4x128xf32>
      %c0_63 = arith.constant 0 : index
      %c2 = arith.constant 2 : index
      %c0_64 = arith.constant 0 : index
      %c0_65 = arith.constant 0 : index
      %65 = vector.load %arg5[%c0_63, %c2, %c0_64, %c0_65] : memref<1x4x4x128xf32, #tpu.memory_space<vmem>>, vector<1x1x4x128xf32>
      %66 = vector.shape_cast %65 : vector<1x1x4x128xf32> to vector<4x128xf32>
      %67 = vector.shape_cast %64 : vector<4x128xf32> to vector<1x1x4x128xf32>
      tpu.vector_store %arg5[%c0_63, %c2, %c0_64, %c0_65], %67 {strides = array<i32>} : memref<1x4x4x128xf32, #tpu.memory_space<vmem>>, vector<1x1x4x128xf32>,
      %c0_66 = arith.constant 0 : index
      %c0_67 = arith.constant 0 : index
      %c0_68 = arith.constant 0 : index
      %68 = vector.load %arg9[%c0_66, %c0_67, %c0_68] : memref<4x2x128xf32, #tpu.memory_space<vmem>>, vector<4x2x128xf32>
      %cst_69 = arith.constant dense<0.000000e+00> : vector<4x128xf32>
      %69 = vector.multi_reduction <add>, %68, %cst_69 [1] : vector<4x2x128xf32> to vector<4x128xf32>
      %c0_70 = arith.constant 0 : index
      %c3 = arith.constant 3 : index
      %c0_71 = arith.constant 0 : index
      %c0_72 = arith.constant 0 : index
      %70 = vector.load %arg5[%c0_70, %c3, %c0_71, %c0_72] : memref<1x4x4x128xf32, #tpu.memory_space<vmem>>, vector<1x1x4x128xf32>
      %71 = vector.shape_cast %70 : vector<1x1x4x128xf32> to vector<4x128xf32>
      %72 = vector.shape_cast %69 : vector<4x128xf32> to vector<1x1x4x128xf32>
      tpu.vector_store %arg5[%c0_70, %c3, %c0_71, %c0_72], %72 {strides = array<i32>} : memref<1x4x4x128xf32, #tpu.memory_space<vmem>>, vector<1x1x4x128xf32>,
    } else {
    }
    return
  }
  func.func @transform_0(%arg0: i32, %arg1: i32) -> (i32, i32, i32, i32) {
    %c1_i32 = arith.constant 1 : i32
    %0 = arith.muli %arg0, %c1_i32 : i32
    %1 = arith.addi %0, %arg1 : i32
    %c0_i32 = arith.constant 0 : i32
    %c0_i32_0 = arith.constant 0 : i32
    %c0_i32_1 = arith.constant 0 : i32
    %c0_i32_2 = arith.constant 0 : i32
    return %c0_i32, %c0_i32_0, %1, %c0_i32_1 : i32, i32, i32, i32
  }
  func.func @transform_1(%arg0: i32, %arg1: i32) -> (i32, i32, i32, i32) {
    %c1_i32 = arith.constant 1 : i32
    %0 = arith.muli %arg0, %c1_i32 : i32
    %1 = arith.addi %0, %arg1 : i32
    %c0_i32 = arith.constant 0 : i32
    %c0_i32_0 = arith.constant 0 : i32
    %c0_i32_1 = arith.constant 0 : i32
    %c0_i32_2 = arith.constant 0 : i32
    return %c0_i32, %c0_i32_0, %1, %c0_i32_1 : i32, i32, i32, i32
  }
  func.func @transform_2(%arg0: i32, %arg1: i32) -> (i32, i32, i32, i32) {
    %c0_i32 = arith.constant 0 : i32
    %c0_i32_0 = arith.constant 0 : i32
    %c0_i32_1 = arith.constant 0 : i32
    %c0_i32_2 = arith.constant 0 : i32
    %c0_i32_3 = arith.constant 0 : i32
    return %c0_i32, %c0_i32_0, %c0_i32_1, %c0_i32_2 : i32, i32, i32, i32
  }
  func.func @transform_3(%arg0: i32, %arg1: i32) -> (i32, i32, i32, i32) {
    %c0_i32 = arith.constant 0 : i32
    %c0_i32_0 = arith.constant 0 : i32
    %c0_i32_1 = arith.constant 0 : i32
    %c0_i32_2 = arith.constant 0 : i32
    return %arg0, %c0_i32, %c0_i32_0, %c0_i32_1 : i32, i32, i32, i32
  }
}

</mosaic_0001>

<bundles_post_ra>
// kernel: tpu_custom_call.1
= control target key start
LH: loop header
LB: loop body
LE: loop exit
PB: predicated region body
PF: predicated region fallthrough
CT: control target
= control target key end

     0   :  { %8 = vsyncpa [#allocation7], 0  ;;  %s1038_s0 = inlined_call_operand.hbm [shape: f32[2,4,2,128], index: 0, kind: input, shape index: {}]   ;;  %s1039_s1 = inlined_call_operand.hbm [shape: s32[2,1,2,128], index: 1, kind: input, shape index: {}]   ;;  %s1040_s2 = inlined_call_operand.hbm [shape: s32[1,4,1,128], index: 2, kind: input, shape index: {}]   ;;  %s1041_s3 = inlined_call_operand.hbm [shape: f32[1,4,4,128], index: 3, kind: output, shape index: {}]  }
   0x1   :  { %9 = vsyncpa [#allocation10], 0 }
   0x2   :  { %10 = vsyncpa [#allocation8], 0  ;;  %s34_s14 = sshll.u32 %s1039_s1, 4  ;;  %s713_s15 = smov [#allocation9]   ;;  %s35_s14 = int_to_ptr.hbm [resolvable:$true] %s34_s14 }
   0x3   :  { %s36_s16 = sshll.u32 %s713_s15, 4  ;;  %s18_s19 = sshll.u32 %s1038_s0, 4  ;;  %s37_s16 = int_to_ptr.vmem [resolvable:$true] %s36_s16  ;;  %s19_s19 = int_to_ptr.hbm [resolvable:$true] %s18_s19 }
   0x4   :  { %s714_s20 = smov 32   ;;  %s715_s21 = smov 2  }
   0x5   :  { %42 = dma.hbm_to_vmem [thread:$0]  %s35_s14, 64, %s37_s16, [#allocation10], %s714_s20, %s714_s20, %s715_s21  }
   0x6   :  { %s716_s22 = smov [#allocation6]   ;;  %s47_s26 = sshll.u32 %s1040_s2, 4  ;;  %s48_s26 = int_to_ptr.hbm [resolvable:$true] %s47_s26 }
   0x7   :  { %s20_s23 = sshll.u32 %s716_s22, 4  ;;  %s717_s1 = smov [#allocation11]   ;;  %s21_s23 = int_to_ptr.vmem [resolvable:$true] %s20_s23 }
   0x8   :  { %26 = dma.hbm_to_vmem [thread:$0]  %s19_s19, 256, %s21_s23, [#allocation7], %s714_s20, %s714_s20, %s715_s21  }
   0x9   :  { %s49_s27 = sshll.u32 %s717_s1, 4  ;;  %s718_s28 = smov 16   ;;  %s50_s27 = int_to_ptr.vmem [resolvable:$true] %s49_s27 }
   0xa   :  { %s719_s29 = smov 1  }
   0xb   :  { %55 = dma.hbm_to_vmem [thread:$0]  %s48_s26, 64, %s50_s27, [#allocation10], %s718_s28, %s718_s28, %s719_s29  }
   0xc   :  { %707 = dma.done.wait [#allocation7], 256  }
   0xd   :  { %708 = vsyncadd [#allocation7], 4294967040 }
   0xe   :  { %709 = dma.done.wait [#allocation10], 128  }
   0xf   :  { %710 = vsyncadd [#allocation10], 4294967168  ;;  %v720_v0 = vmov 0.0   ;;  %v760_v1 = vld [vmem:[#allocation9] sm:$0x3]  ;;  %vm104_vm0 = vcmask 1041408  }
  0x10   :  { %82 = vst [vmem:[#allocation4] sm:$0x3] %v720_v0  ;;  %v762_v2 = vld [vmem:[#allocation9 + $0x2] sm:$0x3]  ;;  %v583_v3 = vld [vmem:[#allocation11] ss:$0 sm:$0xff] }
  0x11   :  { %74 = vst [vmem:[#allocation2] sm:$0x3] %v720_v0  ;;  %vm203_vm1 = vcmp.eq.s32.totalorder %v583_v3, %v760_v1  ;;  %vm207_vm2 = vcmp.eq.s32.totalorder %v583_v3, %v762_v2  ;;  %v584_v5 = vld [vmem:[#allocation11 + $0x1] ss:$0 sm:$0xff]  ;;  %v776_v8 = vld [vmem:[#allocation6] sm:$0x3] }
  0x12   :  { %75 = vst [vmem:[#allocation2 + $0x2] sm:$0x3] %v720_v0  ;;  %v771_v6 = vsel %vm203_vm1, 1.0, %v720_v0  ;;  %v774_v7 = vsel %vm207_vm2, 1.0, %v720_v0  ;;  %v778_v9 = vld [vmem:[#allocation6 + $0x2] sm:$0x3]  ;;  %vm204_vm3 = vcmp.eq.s32.totalorder %v584_v5, %v760_v1  ;;  %vm208_vm4 = vcmp.eq.s32.totalorder %v584_v5, %v762_v2 }
  0x13   :  { %76 = vst [vmem:[#allocation2 + $0x4] sm:$0x3] %v720_v0  ;;  %v309_v10 = vsel %vm104_vm0, %v771_v6, 0.0  ;;  %v310_v11 = vsel %vm104_vm0, %v774_v7, 0.0  ;;  %v787_v12 = vld [vmem:[#allocation6 + $0x4] sm:$0x3] }
  0x14   :  { %77 = vst [vmem:[#allocation2 + $0x6] sm:$0x3] %v720_v0  ;;  %v311_v13 = vadd.f32 %v310_v11, %v309_v10  ;;  %v791_v14 = vsel %vm204_vm3, 1.0, %v720_v0  ;;  %v794_v15 = vsel %vm208_vm4, 1.0, %v720_v0  ;;  %v796_v16 = vld [vmem:[#allocation6 + $0x6] sm:$0x3] }
  0x15   :  { %78 = vst [vmem:[#allocation3] sm:$0x3] %v720_v0  ;;  %v312_v17 = vsel %vm104_vm0, %v791_v14, 0.0  ;;  %v313_v18 = vsel %vm104_vm0, %v794_v15, 0.0  ;;  %v803_v19 = vld [vmem:[#allocation6 + $0x8] sm:$0x3] }
  0x16   :  { %79 = vst [vmem:[#allocation3 + $0x2] sm:$0x3] %v720_v0  ;;  %v314_v21 = vadd.f32 %v313_v18, %v312_v17  ;;  %v806_v22 = vld [vmem:[#allocation6 + $0xa] sm:$0x3]  ;;  %v808_v23 = vld [vmem:[#allocation6 + $0xc] sm:$0x3] }
  0x17   :  { %80 = vst [vmem:[#allocation3 + $0x4] sm:$0x3] %v720_v0  ;;  %v305_v4 = vld [vmem:[#allocation4] sm:$0x3]  ;;  %v811_v24 = vld [vmem:[#allocation6 + $0xe] sm:$0x3] }
  0x18   :  { %81 = vst [vmem:[#allocation3 + $0x6] sm:$0x3] %v720_v0  ;;  %v321_v20 = vadd.f32 %v311_v13, %v305_v4  ;;  %v105_v25 = vsel %vm104_vm0, %v776_v8, -inf  ;;  %v106_v26 = vsel %vm104_vm0, %v778_v9, -inf  ;;  %v107_v28 = vsel %vm104_vm0, %v787_v12, -inf  ;;  %s721_s0 = smov [#allocation12]  }
  0x19   :  { %83 = vst [vmem:[#allocation4 + $0x2] sm:$0x3] %v720_v0  ;;  %v109_v29 = vsel %vm104_vm0, %v796_v16, -inf  ;;  %v108_v31 = vmax.f32 %v105_v25, %v107_v28  ;;  %v112_v33 = vsel %vm104_vm0, %v803_v19, -inf  ;;  %v113_v34 = vsel %vm104_vm0, %v806_v22, -inf  ;;  %s546_s2 = sshll.u32 %s721_s0, 4  ;;  %s547_s2 = int_to_ptr.vmem [resolvable:$true] %s546_s2 }
  0x1a   :  { %84 = vst [vmem:[#allocation4 + $0x4] sm:$0x3] %v720_v0  ;;  %v110_v32 = vmax.f32 %v106_v26, %v109_v29  ;;  %v114_v35 = vsel %vm104_vm0, %v808_v23, -inf  ;;  %v116_v36 = vsel %vm104_vm0, %v811_v24, -inf  ;;  %v585_v54 = vld [vmem:[#allocation11 + $0x2] ss:$0 sm:$0xff] }
  0x1b   :  { %85 = vst [vmem:[#allocation4 + $0x6] sm:$0x3] %v720_v0  ;;  %v115_v38 = vmax.f32 %v112_v33, %v114_v35  ;;  %v117_v39 = vmax.f32 %v113_v34, %v116_v36  ;;  %v586_v56 = vld [vmem:[#allocation11 + $0x3] ss:$0 sm:$0xff]  ;;  %vm205_vm5 = vcmp.eq.s32.totalorder %v585_v54, %v760_v1  ;;  %vm209_vm6 = vcmp.eq.s32.totalorder %v585_v54, %v762_v2  ;;  %s548_s5 = sshll.u32 %s1041_s3, 4  ;;  %s722_s6 = smov 64   ;;  %s549_s5 = int_to_ptr.hbm [resolvable:$true] %s548_s5 }
  0x1c   :  { %86 = vst [vmem:[#allocation5] sm:$0x3] %v720_v0  ;;  %v829_v37 = vmax.f32 %v108_v31, %v110_v32  ;;  %v852_v59 = vsel %vm205_vm5, 1.0, %v720_v0  ;;  %vm206_vm7 = vcmp.eq.s32.totalorder %v586_v56, %v760_v1  ;;  %v856_v60 = vsel %vm209_vm6, 1.0, %v720_v0  ;;  %s723_s7 = smov 4  }
  0x1d   :  { %87 = vst [vmem:[#allocation5 + $0x2] sm:$0x3] %v720_v0  ;;  %v831_v40 = vmax.f32 %v115_v38, %v117_v39  ;;  %vm210_vm8 = vcmp.eq.s32.totalorder %v586_v56, %v762_v2  ;;  %v860_v61 = vsel %vm206_vm7, 1.0, %v720_v0  ;;  %v315_v62 = vsel %vm104_vm0, %v852_v59, 0.0 }
  0x1e   :  { %88 = vst [vmem:[#allocation5 + $0x4] sm:$0x3] %v720_v0  ;;  %v119_v41 = vsub.f32 %v776_v8, %v829_v37  ;;  %v120_v42 = vsub.f32 %v778_v9, %v829_v37  ;;  %v121_v43 = vsub.f32 %v787_v12, %v829_v37  ;;  %v122_v44 = vsub.f32 %v796_v16, %v829_v37 }
  0x1f   :  { %89 = vst [vmem:[#allocation5 + $0x6] sm:$0x3] %v720_v0  ;;  %v123_v45 = vsub.f32 %v803_v19, %v831_v40  ;;  %v124_v46 = vsub.f32 %v806_v22, %v831_v40  ;;  %v125_v47 = vsub.f32 %v808_v23, %v831_v40  ;;  %v126_v51 = vsub.f32 %v811_v24, %v831_v40 }
  0x20   :  { %325 = vst [vmem:[#allocation4] sm:$0x3] %v321_v20  ;;  %v306_v27 = vld [vmem:[#allocation4 + $0x2] sm:$0x3]  ;;  %v127_v48 = vmul.f32 1.442695, %v119_v41 }
  0x21   :  { %v322_v30 = vadd.f32 %v314_v21, %v306_v27  ;;  %v129_v49 = vmul.f32 1.442695, %v120_v42  ;;  %v131_v50 = vmul.f32 1.442695, %v121_v43  ;;  %v133_v52 = vmul.f32 1.442695, %v122_v44 }
  0x22   :  { %587 = vpow2.f32 %v127_v48  ;;  %v135_v53 = vmul.f32 1.442695, %v123_v45  ;;  %v137_v55 = vmul.f32 1.442695, %v124_v46  ;;  %v139_v57 = vmul.f32 1.442695, %v125_v47 }
  0x23   :  { %326 = vst [vmem:[#allocation4 + $0x2] sm:$0x3] %v322_v30  ;;  %589 = vpow2.f32 %v129_v49  ;;  %v141_v58 = vmul.f32 1.442695, %v126_v51  ;;  %v316_v63 = vsel %vm104_vm0, %v856_v60, 0.0  ;;  %v867_v3 = vsel %vm210_vm8, 1.0, %v720_v0 }
  0x24   :  { %591 = vpow2.f32 %v131_v50  ;;  %v317_v5 = vadd.f32 %v316_v63, %v315_v62  ;;  %v318_v10 = vsel %vm104_vm0, %v860_v61, 0.0  ;;  %v319_v11 = vsel %vm104_vm0, %v867_v3, 0.0  ;;  %v307_v18 = vld [vmem:[#allocation4 + $0x4] sm:$0x3]  ;;  %v308_v27 = vld [vmem:[#allocation4 + $0x6] sm:$0x3] }
  0x25   :  { %593 = vpow2.f32 %v133_v52  ;;  %v320_v20 = vadd.f32 %v319_v11, %v318_v10  ;;  %vm227_vm9 = vcmp.ge.s32.totalorder %v760_v1, 0  ;;  %vm228_vm10 = vcmp.ge.s32.totalorder %v762_v2, 0 }
  0x26   :  { %595 = vpow2.f32 %v135_v53  ;;  %v323_v26 = vadd.f32 %v317_v5, %v307_v18  ;;  %vm408_vm4 = vcmask 1041409   ;;  %vm410_vm5 = vcmask 1042434  }
  0x27   :  { %597 = vpow2.f32 %v137_v55  ;;  %v324_v31 = vadd.f32 %v320_v20, %v308_v27  ;;  %v908_v55 = vsel %vm227_vm9, 1.0, %v720_v0  ;;  %vm412_vm6 = vcmask 1043459  }
  0x28   :  { %v869_v4 = vpop.eup %587  ;;  %599 = vpow2.f32 %v139_v57  ;;  %327 = vst [vmem:[#allocation4 + $0x4] sm:$0x3] %v323_v26  ;;  %v911_v57 = vsel %vm228_vm10, 1.0, %v720_v0 }
  0x29   :  { %v875_v13 = vpop.eup %589  ;;  %601 = vpow2.f32 %v141_v58  ;;  %v143_v17 = vsel %vm104_vm0, %v869_v4, 0.0  ;;  %328 = vst [vmem:[#allocation4 + $0x6] sm:$0x3] %v324_v31 }
  0x2a   :  { %v879_v21 = vpop.eup %591  ;;  %v144_v25 = vsel %vm104_vm0, %v875_v13, 0.0 }
  0x2b   :  { %v883_v28 = vpop.eup %593  ;;  %v145_v29 = vadd.f32 %v144_v25, %v143_v17  ;;  %v146_v30 = vsel %vm104_vm0, %v879_v21, 0.0 }
  0x2c   :  { %v887_v32 = vpop.eup %595  ;;  %v148_v33 = vsel %vm104_vm0, %v883_v28, 0.0 }
  0x2d   :  { %v891_v34 = vpop.eup %597  ;;  %v147_v35 = vadd.f32 %v146_v30, %v145_v29  ;;  %v150_v36 = vsel %vm104_vm0, %v887_v32, 0.0 }
  0x2e   :  { %v895_v38 = vpop.eup %599  ;;  %v151_v39 = vsel %vm104_vm0, %v891_v34, 0.0 }
  0x2f   :  { %v899_v41 = vpop.eup %601  ;;  %v149_v42 = vadd.f32 %v148_v33, %v147_v35  ;;  %v152_v43 = vadd.f32 %v151_v39, %v150_v36  ;;  %v153_v44 = vsel %vm104_vm0, %v895_v38, 0.0 }
  0x30   :  { %v155_v45 = vsel %vm104_vm0, %v899_v41, 0.0 }
  0x31   :  { %v154_v46 = vadd.f32 %v153_v44, %v152_v43  ;;  %603 = vrcp.f32 %v149_v42  ;;  %v166_v49 = vand.u32 2147483647, %v149_v42  ;;  %v168_v50 = vand.u32 2147483648, %v149_v42 }
  0x32   :  { %605 = vlog2.f32 %v149_v42  ;;  %vm162_vm11 = vweird.f32 %v149_v42 }
  0x33   :  { %v156_v47 = vadd.f32 %v155_v45, %v154_v46  ;;  %vm914_vm13 = vcmp.eq.f32.partialorder %v166_v49, 8.507059e+37  ;;  %v169_v2 = vor.u32 1.1754944e-38, %v168_v50 }
  0x35   :  { %607 = vrcp.f32 %v156_v47  ;;  %v180_v53 = vand.u32 2147483647, %v156_v47  ;;  %vm176_vm14 = vweird.f32 %v156_v47  ;;  %v182_v17 = vand.u32 2147483648, %v156_v47 }
  0x36   :  { %609 = vlog2.f32 %v156_v47 }
  0x37   :  { %v604_v48 = vpop.eup %603  ;;  %vm918_vm15 = vcmp.eq.f32.partialorder %v180_v53, 8.507059e+37  ;;  %v183_v36 = vor.u32 1.1754944e-38, %v182_v17  ;;  %v332_v17 = vld [vmem:[#allocation5 + $0x6] sm:$0x3] }
  0x38   :  { %v606_v51 = vpop.eup %605  ;;  %v158_v52 = vmul.f32 %v604_v48, %v149_v42  ;;  %vm163_vm12 = vweird.f32 %v604_v48 }
  0x39   :  { %v194_v54 = vmul.f32 0.6931472, %v606_v51  ;;  %vm927_vm1 = vmor %vm162_vm11, %vm163_vm12 }
  0x3a   :  { %v159_v56 = vsub.f32 1.0, %v158_v52  ;;  %v329_v52 = vld [vmem:[#allocation5] sm:$0x3] }
  0x3b   :  { %v608_v58 = vpop.eup %607  ;;  %v197_v1 = vadd.f32 %v194_v54, %v829_v37  ;;  %v330_v54 = vld [vmem:[#allocation5 + $0x2] sm:$0x3] }
  0x3c   :  { %v610_v63 = vpop.eup %609  ;;  %v160_v5 = vmul.f32 %v604_v48, %v159_v56  ;;  %v172_v10 = vmul.f32 %v608_v58, %v156_v47  ;;  %vm177_vm2 = vweird.f32 %v608_v58 }
  0x3d   :  { %v196_v18 = vmul.f32 0.6931472, %v610_v63  ;;  %v333_v0 = vsub.f32 %v197_v1, %v776_v8  ;;  %v334_v20 = vsub.f32 %v197_v1, %v778_v9  ;;  %v335_v37 = vsub.f32 %v197_v1, %v787_v12  ;;  %vm949_vm3 = vmor %vm176_vm14, %vm177_vm2 }
  0x3e   :  { %v336_v26 = vsub.f32 %v197_v1, %v796_v16  ;;  %v161_v27 = vadd.f32 %v604_v48, %v160_v5  ;;  %v173_v29 = vsub.f32 1.0, %v172_v10  ;;  %v331_v5 = vld [vmem:[#allocation5 + $0x4] sm:$0x3] }
  0x3f   :  { %v198_v30 = vadd.f32 %v196_v18, %v831_v40  ;;  %v341_v31 = vmul.f32 %v771_v6, %v333_v0  ;;  %v342_v8 = vmul.f32 %v791_v14, %v334_v20  ;;  %v343_v9 = vmul.f32 %v852_v59, %v335_v37 }
  0x40   :  { %v344_v12 = vmul.f32 %v860_v61, %v336_v26  ;;  %v165_v33 = vsel %vm927_vm1, %v604_v48, %v161_v27  ;;  %v174_v35 = vmul.f32 %v608_v58, %v173_v29  ;;  %v236_v48 = vld [vmem:[#allocation2 + $0x6] sm:$0x3] }
  0x41   :  { %v337_v16 = vsub.f32 %v198_v30, %v803_v19  ;;  %v349_v39 = vsel %vm104_vm0, %v341_v31, 0.0  ;;  %v338_v42 = vsub.f32 %v198_v30, %v806_v22  ;;  %v352_v40 = vsel %vm104_vm0, %v342_v8, 0.0  ;;  %v233_v31 = vld [vmem:[#allocation2] sm:$0x3] }
  0x42   :  { %v339_v43 = vsub.f32 %v198_v30, %v808_v23  ;;  %v355_v44 = vsel %vm104_vm0, %v343_v9, 0.0  ;;  %v340_v45 = vsub.f32 %v198_v30, %v811_v24  ;;  %v358_v46 = vsel %vm104_vm0, %v344_v12, 0.0 }
  0x43   :  { %v345_v19 = vmul.f32 %v774_v7, %v337_v16  ;;  %v346_v22 = vmul.f32 %v794_v15, %v338_v42  ;;  %v170_v49 = vsel %vm914_vm13, %v169_v2, %v165_v33  ;;  %v175_v23 = vadd.f32 %v608_v58, %v174_v35 }
  0x44   :  { %v347_v50 = vmul.f32 %v856_v60, %v339_v43  ;;  %v348_v24 = vmul.f32 %v867_v3, %v340_v45  ;;  %v185_v51 = vmul.f32 %v869_v4, %v170_v49  ;;  %v186_v47 = vmul.f32 %v875_v13, %v170_v49 }
  0x45   :  { %v350_v53 = vsel %vm104_vm0, %v345_v19, 0.0  ;;  %v353_v56 = vsel %vm104_vm0, %v346_v22, 0.0  ;;  %v179_v1 = vsel %vm949_vm3, %v608_v58, %v175_v23  ;;  %v187_v62 = vmul.f32 %v879_v21, %v170_v49 }
  0x46   :  { %v351_v2 = vadd.f32 %v350_v53, %v349_v39  ;;  %v354_v63 = vadd.f32 %v353_v56, %v352_v40  ;;  %v356_v10 = vsel %vm104_vm0, %v347_v50, 0.0  ;;  %v359_v4 = vsel %vm104_vm0, %v348_v24, 0.0  ;;  %v265_v50 = vld [vmem:[#allocation3] sm:$0x3] }
  0x47   :  { %v357_v13 = vadd.f32 %v356_v10, %v355_v44  ;;  %v360_v18 = vadd.f32 %v359_v4, %v358_v46  ;;  %v184_v0 = vsel %vm918_vm15, %v183_v36, %v179_v1  ;;  %v237_v20 = vmul.f32 %v771_v6, %v185_v51  ;;  %v458_v10 = vld [vmem:[#allocation4] sm:$0x3]  ;;  %v267_v4 = vld [vmem:[#allocation3 + $0x4] sm:$0x3] }
  0x48   :  { %v361_v37 = vadd.f32 %v351_v2, %v329_v52  ;;  %v362_v25 = vadd.f32 %v354_v63, %v330_v54  ;;  %v189_v58 = vmul.f32 %v887_v32, %v184_v0  ;;  %v190_v21 = vmul.f32 %v891_v34, %v184_v0  ;;  %v234_v32 = vld [vmem:[#allocation2 + $0x2] sm:$0x3]  ;;  %v266_v52 = vld [vmem:[#allocation3 + $0x2] sm:$0x3] }
  0x49   :  { %v363_v26 = vadd.f32 %v357_v13, %v331_v5  ;;  %v364_v27 = vadd.f32 %v360_v18, %v332_v17  ;;  %v245_v29 = vsel %vm104_vm0, %v237_v20, 0.0  ;;  %v238_v30 = vmul.f32 %v791_v14, %v186_v47  ;;  %v460_v20 = vld [vmem:[#allocation4 + $0x4] sm:$0x3] }
  0x4a   :  { %365 = vst [vmem:[#allocation5] sm:$0x3] %v361_v37  ;;  %v241_v8 = vmul.f32 %v774_v7, %v189_v58  ;;  %v242_v11 = vmul.f32 %v794_v15, %v190_v21  ;;  %v191_v6 = vmul.f32 %v895_v38, %v184_v0  ;;  %v239_v9 = vmul.f32 %v852_v59, %v187_v62 }
  0x4b   :  { %366 = vst [vmem:[#allocation5 + $0x2] sm:$0x3] %v362_v25  ;;  %v248_v34 = vsel %vm104_vm0, %v238_v30, 0.0  ;;  %v188_v12 = vmul.f32 %v883_v28, %v170_v49  ;;  %v192_v33 = vmul.f32 %v899_v41, %v184_v0  ;;  %v269_v35 = vmul.f32 %v185_v51, %v185_v51  ;;  %v235_v28 = vld [vmem:[#allocation2 + $0x4] sm:$0x3] }
  0x4c   :  { %367 = vst [vmem:[#allocation5 + $0x4] sm:$0x3] %v363_v26  ;;  %v246_v14 = vsel %vm104_vm0, %v241_v8, 0.0  ;;  %v249_v7 = vsel %vm104_vm0, %v242_v11, 0.0  ;;  %v243_v15 = vmul.f32 %v856_v60, %v191_v6  ;;  %v251_v38 = vsel %vm104_vm0, %v239_v9, 0.0 }
  0x4d   :  { %368 = vst [vmem:[#allocation5 + $0x6] sm:$0x3] %v364_v27  ;;  %v247_v59 = vadd.f32 %v246_v14, %v245_v29  ;;  %v250_v36 = vadd.f32 %v249_v7, %v248_v34  ;;  %v240_v16 = vmul.f32 %v860_v61, %v188_v12  ;;  %v244_v39 = vmul.f32 %v867_v3, %v192_v33  ;;  %v459_v0 = vld [vmem:[#allocation4 + $0x2] sm:$0x3] }
  0x4e   :  { %v252_v41 = vsel %vm104_vm0, %v243_v15, 0.0  ;;  %v273_v42 = vmul.f32 %v189_v58, %v189_v58  ;;  %v277_v40 = vmul.f32 %v908_v55, %v269_v35  ;;  %v270_v43 = vmul.f32 %v186_v47, %v186_v47 }
  0x4f   :  { %v257_v44 = vadd.f32 %v247_v59, %v233_v31  ;;  %v258_v45 = vadd.f32 %v250_v36, %v234_v32  ;;  %v253_v46 = vadd.f32 %v252_v41, %v251_v38  ;;  %v254_v60 = vsel %vm104_vm0, %v240_v16, 0.0  ;;  %v268_v32 = vld [vmem:[#allocation3 + $0x6] sm:$0x3] }
  0x50   :  { %v255_v19 = vsel %vm104_vm0, %v244_v39, 0.0  ;;  %v281_v22 = vmul.f32 %v911_v57, %v273_v42  ;;  %v285_v61 = vsel %vm104_vm0, %v277_v40, 0.0  ;;  %v274_v3 = vmul.f32 %v190_v21, %v190_v21  ;;  %v461_v21 = vld [vmem:[#allocation4 + $0x6] sm:$0x3] }
  0x51   :  { %261 = vst [vmem:[#allocation2] sm:$0x3] %v257_v44  ;;  %v259_v49 = vadd.f32 %v253_v46, %v235_v28  ;;  %v256_v23 = vadd.f32 %v255_v19, %v254_v60  ;;  %v278_v24 = vmul.f32 %v908_v55, %v270_v43  ;;  %v271_v51 = vmul.f32 %v187_v62, %v187_v62  ;;  %v500_v31 = vld [vmem:[#allocation5] sm:$0x3] }
  0x52   :  { %262 = vst [vmem:[#allocation2 + $0x2] sm:$0x3] %v258_v45  ;;  %v286_v47 = vsel %vm104_vm0, %v281_v22, 0.0  ;;  %v282_v53 = vmul.f32 %v911_v57, %v274_v3  ;;  %v275_v54 = vmul.f32 %v191_v6, %v191_v6  ;;  %v272_v56 = vmul.f32 %v188_v12, %v188_v12  ;;  %v501_v9 = vld [vmem:[#allocation5 + $0x2] sm:$0x3] }
  0x53   :  { %263 = vst [vmem:[#allocation2 + $0x4] sm:$0x3] %v259_v49  ;;  %v260_v1 = vadd.f32 %v256_v23, %v236_v48  ;;  %v287_v2 = vadd.f32 %v286_v47, %v285_v61  ;;  %v288_v63 = vsel %vm104_vm0, %v278_v24, 0.0  ;;  %v279_v5 = vmul.f32 %v908_v55, %v271_v51  ;;  %v502_v38 = vld [vmem:[#allocation5 + $0x4] sm:$0x3] }
  0x54   :  { %v289_v17 = vsel %vm104_vm0, %v282_v53, 0.0  ;;  %v283_v62 = vmul.f32 %v911_v57, %v275_v54  ;;  %v276_v13 = vmul.f32 %v192_v33, %v192_v33  ;;  %v280_v18 = vmul.f32 %v908_v55, %v272_v56  ;;  %v503_v40 = vld [vmem:[#allocation5 + $0x6] sm:$0x3] }
  0x55   :  { %264 = vst [vmem:[#allocation2 + $0x6] sm:$0x3] %v260_v1  ;;  %v297_v37 = vadd.f32 %v287_v2, %v265_v50  ;;  %v290_v25 = vadd.f32 %v289_v17, %v288_v63  ;;  %v291_v58 = vsel %vm104_vm0, %v279_v5, 0.0  ;;  %v462_v30 = vsel %vm104_vm0, %v458_v10, 0.0 }
  0x56   :  { %v292_v26 = vsel %vm104_vm0, %v283_v62, 0.0  ;;  %v284_v27 = vmul.f32 %v911_v57, %v276_v13  ;;  %v294_v29 = vsel %vm104_vm0, %v280_v18, 0.0  ;;  %v463_v11 = vrot.slane %v462_v30, 4 }
  0x57   :  { %301 = vst [vmem:[#allocation3] sm:$0x3] %v297_v37  ;;  %v298_v8 = vadd.f32 %v290_v25, %v266_v52  ;;  %v293_v55 = vadd.f32 %v292_v26, %v291_v58  ;;  %v469_v6 = vsel %vm104_vm0, %v459_v0, 0.0  ;;  %v476_v33 = vsel %vm104_vm0, %v460_v20, 0.0 }
  0x58   :  { %v295_v34 = vsel %vm104_vm0, %v284_v27, 0.0  ;;  %v470_v12 = vrot.slane %v469_v6, 4  ;;  %v483_v57 = vsel %vm104_vm0, %v461_v21, 0.0  ;;  %v464_v7 = vadd.f32 %v463_v11, %v462_v30  ;;  %v372_v2 = vld [vmem:[#allocation2] sm:$0x3] }
  0x59   :  { %302 = vst [vmem:[#allocation3 + $0x2] sm:$0x3] %v298_v8  ;;  %v299_v35 = vadd.f32 %v293_v55, %v267_v4  ;;  %v296_v14 = vadd.f32 %v295_v34, %v294_v29  ;;  %v477_v15 = vrot.slane %v476_v33, 4  ;;  %v484_v36 = vrot.slane %v483_v57, 4  ;;  %v373_v25 = vld [vmem:[#allocation2 + $0x2] sm:$0x3] }
  0x5a   :  { %v471_v59 = vadd.f32 %v470_v12, %v469_v6  ;;  %v504_v16 = vsel %vm104_vm0, %v500_v31, 0.0  ;;  %v511_v39 = vsel %vm104_vm0, %v501_v9, 0.0  ;;  %v465_v41 = vrot.slane %v464_v7, 2  ;;  %v374_v30 = vld [vmem:[#allocation2 + $0x4] sm:$0x3] }
  0x5b   :  { %303 = vst [vmem:[#allocation3 + $0x4] sm:$0x3] %v299_v35  ;;  %v300_v28 = vadd.f32 %v296_v14, %v268_v32  ;;  %v478_v42 = vadd.f32 %v477_v15, %v476_v33  ;;  %v505_v43 = vrot.slane %v504_v16, 4  ;;  %v485_v45 = vadd.f32 %v484_v36, %v483_v57 }
  0x5c   :  { %v472_v44 = vrot.slane %v471_v59, 2  ;;  %v512_v46 = vrot.slane %v511_v39, 4  ;;  %v518_v60 = vsel %vm104_vm0, %v502_v38, 0.0  ;;  %v466_v48 = vadd.f32 %v465_v41, %v464_v7  ;;  %v375_v11 = vld [vmem:[#allocation2 + $0x6] sm:$0x3] }
  0x5d   :  { %304 = vst [vmem:[#allocation3 + $0x6] sm:$0x3] %v300_v28  ;;  %v479_v19 = vrot.slane %v478_v42, 2  ;;  %v506_v22 = vadd.f32 %v505_v43, %v504_v16  ;;  %v519_v61 = vrot.slane %v518_v60, 4  ;;  %v486_v49 = vrot.slane %v485_v45, 2 }
  0x5e   :  { %v473_v3 = vadd.f32 %v472_v44, %v471_v59  ;;  %v513_v23 = vadd.f32 %v512_v46, %v511_v39  ;;  %v525_v50 = vsel %vm104_vm0, %v503_v40, 0.0  ;;  %v467_v24 = vrot.slane %v466_v48, 1  ;;  %v416_v33 = vld [vmem:[#allocation3] sm:$0x3] }
  0x5f   :  { %v480_v51 = vadd.f32 %v479_v19, %v478_v42  ;;  %v507_v47 = vrot.slane %v506_v22, 2  ;;  %v520_v52 = vadd.f32 %v519_v61, %v518_v60  ;;  %v487_v54 = vadd.f32 %v486_v49, %v485_v45 }
  0x60   :  { %v474_v53 = vrot.slane %v473_v3, 1  ;;  %v514_v56 = vrot.slane %v513_v23, 2  ;;  %v526_v1 = vrot.slane %v525_v50, 4  ;;  %v468_v63 = vadd.f32 %v467_v24, %v466_v48  ;;  %v417_v15 = vld [vmem:[#allocation3 + $0x2] sm:$0x3] }
  0x61   :  { %v481_v5 = vrot.slane %v480_v51, 1  ;;  %v508_v10 = vadd.f32 %v507_v47, %v506_v22  ;;  %v521_v17 = vrot.slane %v520_v52, 2  ;;  %v488_v62 = vrot.slane %v487_v54, 1 }
  0x62   :  { %v475_v4 = vadd.f32 %v474_v53, %v473_v3  ;;  %v515_v13 = vadd.f32 %v514_v56, %v513_v23  ;;  %v527_v18 = vadd.f32 %v526_v1, %v525_v50  ;;  %v376_v58 = vsel %vm104_vm0, %v372_v2, 0.0  ;;  %v418_v40 = vld [vmem:[#allocation3 + $0x4] sm:$0x3] }
  0x63   :  { %v482_v0 = vadd.f32 %v481_v5, %v480_v51  ;;  %v509_v20 = vrot.slane %v508_v10, 1  ;;  %v522_v37 = vadd.f32 %v521_v17, %v520_v52  ;;  %v489_v21 = vadd.f32 %v488_v62, %v487_v54 }
  0x64   :  { %v494_v26 = vsel %vm408_vm4, %v475_v4, %v468_v63  ;;  %v516_v27 = vrot.slane %v515_v13, 1  ;;  %v528_v29 = vrot.slane %v527_v18, 2  ;;  %v377_v6 = vrot.slane %v376_v58, 4  ;;  %v419_v22 = vld [vmem:[#allocation3 + $0x6] sm:$0x3] }
  0x65   :  { %v495_v31 = vsel %vm410_vm5, %v482_v0, %v494_v26  ;;  %v510_v8 = vadd.f32 %v509_v20, %v508_v10  ;;  %v523_v55 = vrot.slane %v522_v37, 1  ;;  %v383_v12 = vsel %vm104_vm0, %v373_v25, 0.0 }
  0x66   :  { %v496_v9 = vsel %vm412_vm6, %v489_v21, %v495_v31  ;;  %v517_v32 = vadd.f32 %v516_v27, %v515_v13  ;;  %v529_v34 = vadd.f32 %v528_v29, %v527_v18  ;;  %v378_v35 = vadd.f32 %v377_v6, %v376_v58 }
  0x67   :  { %499 = vst [vmem:[#allocation12 + $0x8] sm:$0xf] %v496_v9  ;;  %v524_v57 = vadd.f32 %v523_v55, %v522_v37  ;;  %v384_v14 = vrot.slane %v383_v12, 4  ;;  %v390_v7 = vsel %vm104_vm0, %v374_v30, 0.0  ;;  %v397_v16 = vsel %vm104_vm0, %v375_v11, 0.0 }
  0x68   :  { %v530_v38 = vrot.slane %v529_v34, 1  ;;  %v536_v59 = vsel %vm408_vm4, %v517_v32, %v510_v8  ;;  %v391_v36 = vrot.slane %v390_v7, 4  ;;  %v379_v28 = vrot.slane %v378_v35, 2 }
  0x69   :  { %v537_v39 = vsel %vm410_vm5, %v524_v57, %v536_v59  ;;  %v385_v41 = vadd.f32 %v384_v14, %v383_v12  ;;  %v398_v42 = vrot.slane %v397_v16, 4  ;;  %v420_v45 = vsel %vm104_vm0, %v416_v33, 0.0 }
  0x6a   :  { %v531_v43 = vadd.f32 %v530_v38, %v529_v34  ;;  %v392_v44 = vadd.f32 %v391_v36, %v390_v7  ;;  %v427_v46 = vsel %vm104_vm0, %v417_v15, 0.0  ;;  %v380_v60 = vadd.f32 %v379_v28, %v378_v35 }
  0x6b   :  { %v386_v48 = vrot.slane %v385_v41, 2  ;;  %v399_v19 = vadd.f32 %v398_v42, %v397_v16  ;;  %v421_v61 = vrot.slane %v420_v45, 4  ;;  %v428_v23 = vrot.slane %v427_v46, 4 }
  0x6c   :  { %v538_v3 = vsel %vm412_vm6, %v531_v43, %v537_v39  ;;  %v393_v49 = vrot.slane %v392_v44, 2  ;;  %v434_v50 = vsel %vm104_vm0, %v418_v40, 0.0  ;;  %v381_v24 = vrot.slane %v380_v60, 1 }
  0x6d   :  { %541 = vst [vmem:[#allocation12 + $0xc] sm:$0xf] %v538_v3  ;;  %v387_v51 = vadd.f32 %v386_v48, %v385_v41  ;;  %v400_v47 = vrot.slane %v399_v19, 2  ;;  %v422_v52 = vadd.f32 %v421_v61, %v420_v45  ;;  %v429_v54 = vadd.f32 %v428_v23, %v427_v46 }
  0x6e   :  { %v394_v53 = vadd.f32 %v393_v49, %v392_v44  ;;  %v435_v56 = vrot.slane %v434_v50, 4  ;;  %v441_v1 = vsel %vm104_vm0, %v419_v22, 0.0  ;;  %v382_v2 = vadd.f32 %v381_v24, %v380_v60 }
  0x6f   :  { %v388_v63 = vrot.slane %v387_v51, 1  ;;  %v401_v5 = vadd.f32 %v400_v47, %v399_v19  ;;  %v423_v10 = vrot.slane %v422_v52, 2  ;;  %v430_v4 = vrot.slane %v429_v54, 2 }
  0x70   :  { %v395_v17 = vrot.slane %v394_v53, 1  ;;  %v436_v62 = vadd.f32 %v435_v56, %v434_v50  ;;  %v442_v13 = vrot.slane %v441_v1, 4 }
  0x71   :  { %v389_v18 = vadd.f32 %v388_v63, %v387_v51  ;;  %v402_v0 = vrot.slane %v401_v5, 1  ;;  %v424_v20 = vadd.f32 %v423_v10, %v422_v52  ;;  %v431_v25 = vadd.f32 %v430_v4, %v429_v54 }
  0x72   :  { %v396_v37 = vadd.f32 %v395_v17, %v394_v53  ;;  %v437_v58 = vrot.slane %v436_v62, 2  ;;  %v443_v21 = vadd.f32 %v442_v13, %v441_v1 }
  0x73   :  { %v403_v26 = vadd.f32 %v402_v0, %v401_v5  ;;  %v409_v27 = vsel %vm408_vm4, %v389_v18, %v382_v2  ;;  %v425_v29 = vrot.slane %v424_v20, 1  ;;  %v432_v31 = vrot.slane %v431_v25, 1 }
  0x74   :  { %v411_v30 = vsel %vm410_vm5, %v396_v37, %v409_v27  ;;  %v438_v8 = vadd.f32 %v437_v58, %v436_v62  ;;  %v444_v55 = vrot.slane %v443_v21, 2 }
  0x75   :  { %v413_v11 = vsel %vm412_vm6, %v403_v26, %v411_v30  ;;  %v426_v6 = vadd.f32 %v425_v29, %v424_v20  ;;  %v433_v9 = vadd.f32 %v432_v31, %v431_v25 }
  0x76   :  { %415 = vst [vmem:[#allocation12] sm:$0xf] %v413_v11  ;;  %v439_v32 = vrot.slane %v438_v8, 1  ;;  %v445_v34 = vadd.f32 %v444_v55, %v443_v21 }
  0x77   :  { %v452_v57 = vsel %vm408_vm4, %v433_v9, %v426_v6 }
  0x78   :  { %v440_v12 = vadd.f32 %v439_v32, %v438_v8  ;;  %v446_v33 = vrot.slane %v445_v34, 1 }
  0x7a   :  { %v447_v35 = vadd.f32 %v446_v33, %v445_v34  ;;  %v453_v14 = vsel %vm410_vm5, %v440_v12, %v452_v57 }
  0x7c   :  { %v454_v7 = vsel %vm412_vm6, %v447_v35, %v453_v14 }
  0x7d   :  { %457 = vst [vmem:[#allocation12 + $0x4] sm:$0xf] %v454_v7 }
  0x7e   :  { %554 = dma.vmem_to_hbm [thread:$0]  %s547_s2, 256, %s549_s5, [#allocation8], %s722_s6, %s722_s6, %s723_s7  }
  0x7f   :  { %711 = dma.done.wait [#allocation8], 256  }
  0x80   :  { %712 = vsyncadd [#allocation8], 4294967040 }
  0x81   :  { %559 = vsyncpa [#allocation7], 1 }
  0x82   :  { %560 = vsyncpa [#allocation10], 1 }
  0x83   :  { %561 = vsyncpa [#allocation8], 1 }

</bundles_post_ra>
